<compile_context>
chip_gen: v6e
topology: v6e:2x2x1
jax: 0.10.0
libtpu: 0.0.40
codegen_flags: <defaults>
</compile_context>

<pallas_src>
import jax
import jax.numpy as jnp
from jax.experimental import pallas as pl
from jax.experimental.pallas import tpu as pltpu

_LANE = 128
_VMEM_LIMIT = 48 * 1024 * 1024   # explicit scoped budget (safe on v5e/v6e 128 MiB, v7x 64 MiB)
_TILE_BUDGET = 24 * 1024 * 1024  # what we let a single grid step's buffers occupy


def _round_up(x, m):
    return ((x + m - 1) // m) * m


def _pick_tile(padded_dim, candidates=(512, 256, 128)):
    """Largest tile in `candidates` that divides the (128-aligned) padded dim."""
    for c in candidates:
        if padded_dim % c == 0:
            return min(c, padded_dim)
    return padded_dim


def _choose_agg_tiles(n_pad, h_pad):
    """VMEM-aware (tm, tn, tk) for the aggregation matmul."""
    tn = _pick_tile(h_pad, (512, 256, 128))
    for tm in (512, 256, 128):
        if n_pad % tm:
            continue
        for tk in (1024, 512, 256, 128):
            if n_pad % tk:
                continue
            vmem = (2 * tm * tk * 2        # A blocks (bf16), double buffered
                    + 2 * tk * tn * 2      # XW blocks (bf16), double buffered
                    + tm * tn * 4          # f32 accumulator scratch
                    + 2 * tm * tn * 4      # f32 output blocks, double buffered
                    + 2 * tn * 4)          # bias block
            if vmem <= _TILE_BUDGET:
                return tm, tn, tk
    return min(n_pad, 128), tn, min(n_pad, 128)


# ---------------------------------------------------------------------------
# Kernel 1: feature transform  XW = X @ W   (cheap, O(N*F*H)), row-tiled.
# ---------------------------------------------------------------------------
def _xw_kernel(x_ref, w_ref, o_ref):
    o_ref[...] = jnp.dot(
        x_ref[...], w_ref[...], preferred_element_type=jnp.float32
    ).astype(o_ref.dtype)


def feature_transform(x_pad, w_pad, tm):
    n_pad, f_pad = x_pad.shape
    h_pad = w_pad.shape[1]
    return pl.pallas_call(
        _xw_kernel,
        out_shape=jax.ShapeDtypeStruct((n_pad, h_pad), jnp.bfloat16),
        grid_spec=pltpu.PrefetchScalarGridSpec(
            num_scalar_prefetch=0,
            grid=(n_pad // tm,),
            in_specs=[
                pl.BlockSpec((tm, f_pad), lambda i: (i, 0)),
                pl.BlockSpec((f_pad, h_pad), lambda i: (0, 0)),  # weight stays resident
            ],
            out_specs=pl.BlockSpec((tm, h_pad), lambda i: (i, 0)),
        ),
        compiler_params=pltpu.CompilerParams(
            dimension_semantics=("parallel",),
            vmem_limit_bytes=_VMEM_LIMIT,
        ),
    )(x_pad, w_pad)


# ---------------------------------------------------------------------------
# Kernel 2: tiled aggregation  out = A_norm @ XW + b
# grid = (N/tm, H/tn, N/tk); f32 VMEM accumulator; bias folded into finalize.
# ---------------------------------------------------------------------------
def _aggregate_kernel(a_ref, xw_ref, b_ref, o_ref, acc_ref):
    k = pl.program_id(2)

    @pl.when(k == 0)
    def _init():
        acc_ref[...] = jnp.zeros_like(acc_ref)

    acc_ref[...] += jnp.dot(
        a_ref[...], xw_ref[...], preferred_element_type=jnp.float32
    )

    @pl.when(k == pl.num_programs(2) - 1)
    def _finalize():
        # bias add is free VPU work under the MXU/DMA-dominated main loop
        o_ref[...] = acc_ref[...] + b_ref[...]


def aggregate(a_pad, xw_pad, bias_pad, tm, tn, tk):
    n_pad = a_pad.shape[0]
    h_pad = xw_pad.shape[1]
    grid = (n_pad // tm, h_pad // tn, n_pad // tk)
    cost = pl.CostEstimate(
        flops=2 * n_pad * n_pad * h_pad,
        transcendentals=0,
        bytes_accessed=(
            a_pad.size * 2 * (h_pad // tn)     # A (bf16) streamed once per output-col tile
            + xw_pad.size * 2 * (n_pad // tm)  # XW (bf16) streamed once per output-row tile
            + n_pad * h_pad * 4                # f32 output written once
        ),
    )
    return pl.pallas_call(
        _aggregate_kernel,
        out_shape=jax.ShapeDtypeStruct((n_pad, h_pad), jnp.float32),
        grid_spec=pltpu.PrefetchScalarGridSpec(
            num_scalar_prefetch=0,
            grid=grid,
            in_specs=[
                pl.BlockSpec((tm, tk), lambda i, j, k: (i, k)),
                pl.BlockSpec((tk, tn), lambda i, j, k: (k, j)),
                pl.BlockSpec((1, tn), lambda i, j, k: (0, j)),
            ],
            out_specs=pl.BlockSpec((tm, tn), lambda i, j, k: (i, j)),
            scratch_shapes=[pltpu.VMEM((tm, tn), jnp.float32)],
        ),
        compiler_params=pltpu.CompilerParams(
            dimension_semantics=("parallel", "parallel", "arbitrary"),
            vmem_limit_bytes=_VMEM_LIMIT,
        ),
        cost_estimate=cost,
    )(a_pad, xw_pad, bias_pad)


# ---------------------------------------------------------------------------
# Forward pass matching GCN.forward with the module defaults.
# ---------------------------------------------------------------------------
def gcn_forward(a_norm, x, params, prop_step=2, residual=0.0):
    n, f = x.shape
    h_feats = params["w1"].shape[1]

    n_pad = _round_up(n, _LANE)
    f_pad = _round_up(f, _LANE)
    h_pad = _round_up(h_feats, _LANE)
    tm, tn, tk = _choose_agg_tiles(n_pad, h_pad)
    tm_xw = _pick_tile(n_pad)

    # Heavy operand (adjacency) streamed as bf16; accumulation stays f32.
    a_pad = jnp.zeros((n_pad, n_pad), jnp.bfloat16).at[:n, :n].set(
        a_norm.astype(jnp.bfloat16))
    x_pad = jnp.zeros((n_pad, f_pad), jnp.float32).at[:n, :f].set(
        x.astype(jnp.float32))

    w1 = jnp.zeros((f_pad, h_pad), jnp.float32).at[:f, :h_feats].set(
        params["w1"].astype(jnp.float32))
    b1 = jnp.zeros((1, h_pad), jnp.float32).at[0, :h_feats].set(
        params["b1"].astype(jnp.float32))
    w2 = jnp.zeros((h_pad, h_pad), jnp.float32).at[:h_feats, :h_feats].set(
        params["w2"].astype(jnp.float32))
    b2 = jnp.zeros((1, h_pad), jnp.float32).at[0, :h_feats].set(
        params["b2"].astype(jnp.float32))

    if residual:
        # As in the PyTorch module, a nonzero residual requires in_feats == h_feats.
        ori = jnp.zeros((n_pad, h_pad), jnp.float32).at[:n, :f].set(
            x.astype(jnp.float32))

    # layer 1: h = conv1(g, x) (+ residual * ori)
    h = aggregate(a_pad, feature_transform(x_pad, w1, tm_xw), b1, tm, tn, tk)
    if residual:
        h = h + residual * ori  # TODO(synk): fold residual into the kernel finalize if ever used.

    for _ in range(1, prop_step):
        # TODO(synk): relu / LayerNorm / Dropout / drop_edge / neg_g-K branches are
        # disabled by the module defaults and are not implemented here.
        h = aggregate(a_pad, feature_transform(h, w2, tm_xw), b2, tm, tn, tk)
        if residual:
            h = h + residual * ori

    return h[:n, :h_feats]


def build_normalized_adjacency(key, n_nodes, n_edges):
    """Random undirected graph -> dense D^{-1/2} A D^{-1/2} (DGL GraphConv norm='both',
    degrees clamped to min 1; no self-loops since drop_edge=False)."""
    k1, k2 = jax.random.split(key)
    src = jax.random.randint(k1, (n_edges,), 0, n_nodes)
    dst = jax.random.randint(k2, (n_edges,), 0, n_nodes)
    a = jnp.zeros((n_nodes, n_nodes), jnp.float32)
    a = a.at[src, dst].set(1.0)
    a = a.at[dst, src].set(1.0)  # undirected
    deg = jnp.maximum(a.sum(axis=1), 1.0)
    d_inv_sqrt = 1.0 / jnp.sqrt(deg)
    return a * d_inv_sqrt[:, None] * d_inv_sqrt[None, :]


if __name__ == "__main__":
    key = jax.random.PRNGKey(0)
    k_adj, k_x, k_w1, k_b1, k_w2, k_b2 = jax.random.split(key, 6)

    n_nodes = 16
    in_feats = 8
    h_feats = 32

    a_norm = build_normalized_adjacency(k_adj, n_nodes, n_edges=40)
    x = jax.random.normal(k_x, (n_nodes, in_feats), jnp.float32)

    params = {
        "w1": jax.random.normal(k_w1, (in_feats, h_feats), jnp.float32) * 0.1,
        "b1": jax.random.normal(k_b1, (h_feats,), jnp.float32) * 0.1,
        "w2": jax.random.normal(k_w2, (h_feats, h_feats), jnp.float32) * 0.1,
        "b2": jax.random.normal(k_b2, (h_feats,), jnp.float32) * 0.1,
    }

    fwd = jax.jit(lambda a, xx, p: gcn_forward(a, xx, p, prop_step=2, residual=0.0))
    out = jax.block_until_ready(fwd(a_norm, x, params))

    # sanity check against pure-JAX f32 reference (bf16-streamed A/XW -> relaxed tol)
    ref1 = a_norm @ (x @ params["w1"]) + params["b1"]
    ref2 = a_norm @ (ref1 @ params["w2"]) + params["b2"]
    assert out.shape == (n_nodes, h_feats)
    assert jnp.allclose(out, ref2, atol=3e-2, rtol=3e-2), "mismatch vs reference"

    print("KERNEL_OK")
</pallas_src>

<mosaic_0001>
module attributes {stable_mosaic.version = 11 : i64} {
  func.func @_xw_kernel(%arg0: i32, %arg1: memref<128x128xf32, #tpu.memory_space<vmem>>, %arg2: memref<128x128xf32, #tpu.memory_space<vmem>>, %arg3: memref<128x128xbf16, #tpu.memory_space<vmem>>) attributes {dimension_semantics = [#tpu.dimension_semantics<parallel>], iteration_bounds = array<i64: 1>, scalar_prefetch = 0 : i64, scratch_operands = 0 : i64, tpu.core_type = #tpu.core_type<tc>, window_params = [{transform_indices = @transform_0, window_bounds = array<i64: 128, 128>}, {pipeline_mode = #tpu.pipeline_mode<synchronous>, transform_indices = @transform_1, window_bounds = array<i64: 128, 128>}, {transform_indices = @transform_2, window_bounds = array<i64: 128, 128>}]} {
    %c0 = arith.constant 0 : index
    %c0_0 = arith.constant 0 : index
    %0 = vector.load %arg1[%c0, %c0_0] : memref<128x128xf32, #tpu.memory_space<vmem>>, vector<128x128xf32>
    %c0_1 = arith.constant 0 : index
    %c0_2 = arith.constant 0 : index
    %1 = vector.load %arg2[%c0_1, %c0_2] : memref<128x128xf32, #tpu.memory_space<vmem>>, vector<128x128xf32>
    %cst = arith.constant dense<0.000000e+00> : vector<128x128xf32>
    %2 = tpu.matmul %0, %1, %cst {dimension_numbers = #tpu.dot_dimension_numbers<[1], [0], [0], [1], [0, 0, 1, 1], [], []>} : vector<128x128xf32>, vector<128x128xf32>, vector<128x128xf32> -> vector<128x128xf32>
    %3 = arith.truncf %2 : vector<128x128xf32> to vector<128x128xbf16>
    %c0_3 = arith.constant 0 : index
    %c0_4 = arith.constant 0 : index
    %4 = vector.load %arg3[%c0_3, %c0_4] : memref<128x128xbf16, #tpu.memory_space<vmem>>, vector<128x128xbf16>
    tpu.vector_store %arg3[%c0_3, %c0_4], %3 {strides = array<i32>} : memref<128x128xbf16, #tpu.memory_space<vmem>>, vector<128x128xbf16>,
    return
  }
  func.func @transform_0(%arg0: i32) -> (i32, i32) {
    %c0_i32 = arith.constant 0 : i32
    %c0_i32_0 = arith.constant 0 : i32
    return %arg0, %c0_i32 : i32, i32
  }
  func.func @transform_1(%arg0: i32) -> (i32, i32) {
    %c0_i32 = arith.constant 0 : i32
    %c0_i32_0 = arith.constant 0 : i32
    %c0_i32_1 = arith.constant 0 : i32
    return %c0_i32, %c0_i32_0 : i32, i32
  }
  func.func @transform_2(%arg0: i32) -> (i32, i32) {
    %c0_i32 = arith.constant 0 : i32
    %c0_i32_0 = arith.constant 0 : i32
    return %arg0, %c0_i32 : i32, i32
  }
}

module attributes {stable_mosaic.version = 11 : i64} {
  func.func @_aggregate_kernel(%arg0: i32, %arg1: i32, %arg2: i32, %arg3: memref<128x128xbf16, #tpu.memory_space<vmem>>, %arg4: memref<128x128xbf16, #tpu.memory_space<vmem>>, %arg5: memref<1x128xf32, #tpu.memory_space<vmem>>, %arg6: memref<128x128xf32, #tpu.memory_space<vmem>>, %arg7: memref<128x128xf32, #tpu.memory_space<vmem>>) attributes {dimension_semantics = [#tpu.dimension_semantics<parallel>, #tpu.dimension_semantics<parallel>, #tpu.dimension_semantics<arbitrary>], iteration_bounds = array<i64: 1, 1, 1>, scalar_prefetch = 0 : i64, scratch_operands = 1 : i64, tpu.core_type = #tpu.core_type<tc>, window_params = [{transform_indices = @transform_0, window_bounds = array<i64: 128, 128>}, {transform_indices = @transform_1, window_bounds = array<i64: 128, 128>}, {transform_indices = @transform_2, window_bounds = array<i64: 1, 128>}, {transform_indices = @transform_3, window_bounds = array<i64: 128, 128>}]} {
    %c0_i32 = arith.constant 0 : i32
    %0 = arith.cmpi eq, %arg2, %c0_i32 : i32
    %1 = arith.extui %0 : i1 to i32
    %c0_i32_0 = arith.constant 0 : i32
    %2 = arith.cmpi ne, %1, %c0_i32_0 : i32
    scf.if %2 {
      %cst_10 = arith.constant 0.000000e+00 : f32
      %12 = vector.broadcast %cst_10 : f32 to vector<128x128xf32>
      %c0_11 = arith.constant 0 : index
      %c0_12 = arith.constant 0 : index
      %13 = vector.load %arg7[%c0_11, %c0_12] : memref<128x128xf32, #tpu.memory_space<vmem>>, vector<128x128xf32>
      tpu.vector_store %arg7[%c0_11, %c0_12], %12 {strides = array<i32>} : memref<128x128xf32, #tpu.memory_space<vmem>>, vector<128x128xf32>,
    } else {
    }
    %c0 = arith.constant 0 : index
    %c0_1 = arith.constant 0 : index
    %3 = vector.load %arg7[%c0, %c0_1] : memref<128x128xf32, #tpu.memory_space<vmem>>, vector<128x128xf32>
    %c0_2 = arith.constant 0 : index
    %c0_3 = arith.constant 0 : index
    %4 = vector.load %arg3[%c0_2, %c0_3] : memref<128x128xbf16, #tpu.memory_space<vmem>>, vector<128x128xbf16>
    %c0_4 = arith.constant 0 : index
    %c0_5 = arith.constant 0 : index
    %5 = vector.load %arg4[%c0_4, %c0_5] : memref<128x128xbf16, #tpu.memory_space<vmem>>, vector<128x128xbf16>
    %cst = arith.constant dense<0.000000e+00> : vector<128x128xf32>
    %6 = tpu.matmul %4, %5, %cst {dimension_numbers = #tpu.dot_dimension_numbers<[1], [0], [0], [1], [0, 0, 1, 1], [], []>} : vector<128x128xbf16>, vector<128x128xbf16>, vector<128x128xf32> -> vector<128x128xf32>
    %7 = arith.addf %3, %6 : vector<128x128xf32>
    %c0_6 = arith.constant 0 : index
    %c0_7 = arith.constant 0 : index
    %8 = vector.load %arg7[%c0_6, %c0_7] : memref<128x128xf32, #tpu.memory_space<vmem>>, vector<128x128xf32>
    tpu.vector_store %arg7[%c0_6, %c0_7], %7 {strides = array<i32>} : memref<128x128xf32, #tpu.memory_space<vmem>>, vector<128x128xf32>,
    %c0_i32_8 = arith.constant 0 : i32
    %9 = arith.cmpi eq, %arg2, %c0_i32_8 : i32
    %10 = arith.extui %9 : i1 to i32
    %c0_i32_9 = arith.constant 0 : i32
    %11 = arith.cmpi ne, %10, %c0_i32_9 : i32
    scf.if %11 {
      %c0_10 = arith.constant 0 : index
      %c0_11 = arith.constant 0 : index
      %12 = vector.load %arg7[%c0_10, %c0_11] : memref<128x128xf32, #tpu.memory_space<vmem>>, vector<128x128xf32>
      %c0_12 = arith.constant 0 : index
      %c0_13 = arith.constant 0 : index
      %13 = vector.load %arg5[%c0_12, %c0_13] : memref<1x128xf32, #tpu.memory_space<vmem>>, vector<1x128xf32>
      %14 = vector.broadcast %13 : vector<1x128xf32> to vector<128x128xf32>
      %15 = arith.addf %12, %14 : vector<128x128xf32>
      %c0_14 = arith.constant 0 : index
      %c0_15 = arith.constant 0 : index
      %16 = vector.load %arg6[%c0_14, %c0_15] : memref<128x128xf32, #tpu.memory_space<vmem>>, vector<128x128xf32>
      tpu.vector_store %arg6[%c0_14, %c0_15], %15 {strides = array<i32>} : memref<128x128xf32, #tpu.memory_space<vmem>>, vector<128x128xf32>,
    } else {
    }
    return
  }
  func.func @transform_0(%arg0: i32, %arg1: i32, %arg2: i32) -> (i32, i32) {
    %c0_i32 = arith.constant 0 : i32
    return %arg0, %arg2 : i32, i32
  }
  func.func @transform_1(%arg0: i32, %arg1: i32, %arg2: i32) -> (i32, i32) {
    %c0_i32 = arith.constant 0 : i32
    return %arg2, %arg1 : i32, i32
  }
  func.func @transform_2(%arg0: i32, %arg1: i32, %arg2: i32) -> (i32, i32) {
    %c0_i32 = arith.constant 0 : i32
    %c0_i32_0 = arith.constant 0 : i32
    return %c0_i32, %arg1 : i32, i32
  }
  func.func @transform_3(%arg0: i32, %arg1: i32, %arg2: i32) -> (i32, i32) {
    %c0_i32 = arith.constant 0 : i32
    return %arg0, %arg1 : i32, i32
  }
}

</mosaic_0001>

<bundles_post_ra>
// kernel: _lambda_.4
= control target key start
LH: loop header
LB: loop body
LE: loop exit
PB: predicated region body
PF: predicated region fallthrough
CT: control target
= control target key end

     0   :  { %s606_s1 = inlined_call_operand.vmem [shape: f32[128,128], index: 1, kind: input, shape index: {}]   ;;  %s607_s0 = inlined_call_operand.vmem [shape: f32[128,128], index: 0, kind: input, shape index: {}]   ;;  %s608_s2 = inlined_call_operand.vmem [shape: bf16[128,128], index: 2, kind: output, shape index: {}]  }
   0x1   :  { %v42_v0 = vld [vmem:[%s606_s1 + $0x78] sm:$0xff]  ;;  %v41_v1 = vld [vmem:[%s606_s1 + $0x70] sm:$0xff]  ;;  %v40_v2 = vld [vmem:[%s606_s1 + $0x68] sm:$0xff] }
   0x2   :  { %383 = vmatprep.subr.mxu0 %v42_v0  ;;  %439 = vmatprep.subr.mxu1 %v42_v0  ;;  %v39_v3 = vld [vmem:[%s606_s1 + $0x60] sm:$0xff]  ;;  %v38_v4 = vld [vmem:[%s606_s1 + $0x58] sm:$0xff]  ;;  %v37_v5 = vld [vmem:[%s606_s1 + $0x50] sm:$0xff] }
   0x3   :  { %384 = vmatpush3.msra.mxu0 %v42_v0  ;;  %455 = vmatpush3.msra.mxu1 %v42_v0  ;;  %v36_v6 = vld [vmem:[%s606_s1 + $0x48] sm:$0xff]  ;;  %v35_v7 = vld [vmem:[%s606_s1 + $0x40] sm:$0xff]  ;;  %v34_v8 = vld [vmem:[%s606_s1 + $0x38] sm:$0xff] }
   0x4   :  { %385 = vmatprep.subr.mxu0 %v41_v1  ;;  %440 = vmatprep.subr.mxu1 %v41_v1  ;;  %v33_v9 = vld [vmem:[%s606_s1 + $0x30] sm:$0xff]  ;;  %v32_v10 = vld [vmem:[%s606_s1 + $0x28] sm:$0xff]  ;;  %v31_v11 = vld [vmem:[%s606_s1 + $0x20] sm:$0xff] }
   0x5   :  { %386 = vmatpush3.msra.mxu0 %v41_v1  ;;  %456 = vmatpush3.msra.mxu1 %v41_v1  ;;  %v30_v12 = vld [vmem:[%s606_s1 + $0x18] sm:$0xff]  ;;  %v29_v13 = vld [vmem:[%s606_s1 + $0x10] sm:$0xff]  ;;  %v28_v14 = vld [vmem:[%s606_s1 + $0x8] sm:$0xff] }
   0x6   :  { %387 = vmatprep.subr.mxu0 %v40_v2  ;;  %441 = vmatprep.subr.mxu1 %v40_v2  ;;  %v27_v15 = vld [vmem:[%s606_s1] sm:$0xff]  ;;  %v12_v18 = vld [vmem:[%s607_s0 + $0x8] sm:$0xff]  ;;  %v13_v20 = vld [vmem:[%s607_s0 + $0x10] sm:$0xff] }
   0x7   :  { %388 = vmatpush3.msra.mxu0 %v40_v2  ;;  %457 = vmatpush3.msra.mxu1 %v40_v2  ;;  %v11_v16 = vld [vmem:[%s607_s0] sm:$0xff]  ;;  %v20_v19 = vld [vmem:[%s607_s0 + $0x48] sm:$0xff]  ;;  %v21_v21 = vld [vmem:[%s607_s0 + $0x50] sm:$0xff] }
   0x8   :  { %389 = vmatprep.subr.mxu0 %v39_v3  ;;  %442 = vmatprep.subr.mxu1 %v39_v3  ;;  %v19_v17 = vld [vmem:[%s607_s0 + $0x40] sm:$0xff]  ;;  %v14_v22 = vld [vmem:[%s607_s0 + $0x18] sm:$0xff]  ;;  %v16_v26 = vld [vmem:[%s607_s0 + $0x28] sm:$0xff] }
   0x9   :  { %390 = vmatpush3.msra.mxu0 %v39_v3  ;;  %458 = vmatpush3.msra.mxu1 %v39_v3  ;;  %v22_v23 = vld [vmem:[%s607_s0 + $0x58] sm:$0xff]  ;;  %v15_v24 = vld [vmem:[%s607_s0 + $0x20] sm:$0xff]  ;;  %v24_v27 = vld [vmem:[%s607_s0 + $0x68] sm:$0xff] }
   0xa   :  { %391 = vmatprep.subr.mxu0 %v38_v4  ;;  %443 = vmatprep.subr.mxu1 %v38_v4  ;;  %v23_v25 = vld [vmem:[%s607_s0 + $0x60] sm:$0xff]  ;;  %v17_v28 = vld [vmem:[%s607_s0 + $0x30] sm:$0xff]  ;;  %v18_v30 = vld [vmem:[%s607_s0 + $0x38] sm:$0xff] }
   0xb   :  { %392 = vmatpush3.msra.mxu0 %v38_v4  ;;  %459 = vmatpush3.msra.mxu1 %v38_v4  ;;  %v25_v29 = vld [vmem:[%s607_s0 + $0x70] sm:$0xff]  ;;  %v26_v31 = vld [vmem:[%s607_s0 + $0x78] sm:$0xff] }
   0xc   :  { %393 = vmatprep.subr.mxu0 %v37_v5  ;;  %444 = vmatprep.subr.mxu1 %v37_v5 }
   0xd   :  { %394 = vmatpush3.msra.mxu0 %v37_v5  ;;  %460 = vmatpush3.msra.mxu1 %v37_v5 }
   0xe   :  { %395 = vmatprep.subr.mxu0 %v36_v6  ;;  %445 = vmatprep.subr.mxu1 %v36_v6 }
   0xf   :  { %396 = vmatpush3.msra.mxu0 %v36_v6  ;;  %461 = vmatpush3.msra.mxu1 %v36_v6 }
  0x10   :  { %397 = vmatprep.subr.mxu0 %v35_v7  ;;  %446 = vmatprep.subr.mxu1 %v35_v7 }
  0x11   :  { %398 = vmatpush3.msra.mxu0 %v35_v7  ;;  %462 = vmatpush3.msra.mxu1 %v35_v7 }
  0x12   :  { %399 = vmatprep.subr.mxu0 %v34_v8  ;;  %447 = vmatprep.subr.mxu1 %v34_v8 }
  0x13   :  { %400 = vmatpush3.msra.mxu0 %v34_v8  ;;  %463 = vmatpush3.msra.mxu1 %v34_v8 }
  0x14   :  { %401 = vmatprep.subr.mxu0 %v33_v9  ;;  %448 = vmatprep.subr.mxu1 %v33_v9 }
  0x15   :  { %402 = vmatpush3.msra.mxu0 %v33_v9  ;;  %464 = vmatpush3.msra.mxu1 %v33_v9 }
  0x16   :  { %403 = vmatprep.subr.mxu0 %v32_v10  ;;  %449 = vmatprep.subr.mxu1 %v32_v10 }
  0x17   :  { %404 = vmatpush3.msra.mxu0 %v32_v10  ;;  %465 = vmatpush3.msra.mxu1 %v32_v10 }
  0x18   :  { %405 = vmatprep.subr.mxu0 %v31_v11  ;;  %450 = vmatprep.subr.mxu1 %v31_v11 }
  0x19   :  { %406 = vmatpush3.msra.mxu0 %v31_v11  ;;  %466 = vmatpush3.msra.mxu1 %v31_v11 }
  0x1a   :  { %407 = vmatprep.subr.mxu0 %v30_v12  ;;  %451 = vmatprep.subr.mxu1 %v30_v12 }
  0x1b   :  { %408 = vmatpush3.msra.mxu0 %v30_v12  ;;  %467 = vmatpush3.msra.mxu1 %v30_v12 }
  0x1c   :  { %409 = vmatprep.subr.mxu0 %v29_v13  ;;  %452 = vmatprep.subr.mxu1 %v29_v13 }
  0x1d   :  { %410 = vmatpush3.msra.mxu0 %v29_v13  ;;  %468 = vmatpush3.msra.mxu1 %v29_v13 }
  0x1e   :  { %411 = vmatprep.subr.mxu0 %v28_v14  ;;  %453 = vmatprep.subr.mxu1 %v28_v14 }
  0x1f   :  { %412 = vmatpush3.msra.mxu0 %v28_v14  ;;  %469 = vmatpush3.msra.mxu1 %v28_v14 }
  0x20   :  { %413 = vmatprep.subr.mxu0 %v27_v15  ;;  %454 = vmatprep.subr.mxu1 %v27_v15 }
  0x21   :  { %414 = vmatpush3.msra.mxu0 %v27_v15  ;;  %470 = vmatpush3.msra.mxu1 %v27_v15 }
  0x22   :  { %415 = vmatprep.mubr.f32.mxu0 %v11_v16  ;;  %427 = vmatprep.mubr.f32.mxu1 %v19_v17 }
  0x23   :  { %416 = vmatmul.mubr.f32.vlgmr.msra.gmra.mxu0 %v12_v18  ;;  %428 = vmatmul.mubr.f32.vlgmr.msra.gmra.mxu1 %v20_v19 }
  0x24   :  { %418 = vmatprep.mubr.f32.mxu0 %v13_v20  ;;  %430 = vmatprep.mubr.f32.mxu1 %v21_v21 }
  0x27   :  { %419 = vmatmul.mubr.f32.gmra.mxu0 %v14_v22  ;;  %431 = vmatmul.mubr.f32.gmra.mxu1 %v22_v23 }
  0x28   :  { %421 = vmatprep.mubr.f32.mxu0 %v15_v24  ;;  %433 = vmatprep.mubr.f32.mxu1 %v23_v25 }
  0x2b   :  { %422 = vmatmul.mubr.f32.gmra.mxu0 %v16_v26  ;;  %434 = vmatmul.mubr.f32.gmra.mxu1 %v24_v27 }
  0x2c   :  { %424 = vmatprep.mubr.f32.mxu0 %v17_v28  ;;  %436 = vmatprep.mubr.f32.mxu1 %v25_v29 }
  0x2f   :  { %425 = vmatmul.mubr.f32.gmra.mxu0 %v18_v30  ;;  %437 = vmatmul.mubr.f32.gmra.mxu1 %v26_v31 }
  0xe3   :  { %v417_v32 = vpop.f32.mrf.mxu0  ;;  %v429_v33 = vpop.f32.mrf.mxu1 }
  0xe5   :  { %v109_v34 = vpop.f32.mrf.mxu0  ;;  %v149_v35 = vpop.f32.mrf.mxu1 }
  0xe6   :  { %v307_v36 = vpack.c.bf16 %v417_v32, %v109_v34  ;;  %v327_v37 = vpack.c.bf16 %v429_v33, %v149_v35 }
  0xe7   :  { %v420_v38 = vpop.f32.mrf.mxu0  ;;  %v432_v39 = vpop.f32.mrf.mxu1 }
  0xe8   :  { %308 = vst [vmem:[%s608_s2] sm:$0xff] %v307_v36   ;;  %347 = vst [vmem:[%s608_s2 + $0x20] sm:$0xff] %v327_v37  }
  0xe9   :  { %v119_v40 = vpop.f32.mrf.mxu0  ;;  %v159_v41 = vpop.f32.mrf.mxu1 }
  0xea   :  { %v312_v42 = vpack.c.bf16 %v420_v38, %v119_v40  ;;  %v332_v43 = vpack.c.bf16 %v432_v39, %v159_v41 }
  0xeb   :  { %v423_v44 = vpop.f32.mrf.mxu0  ;;  %v435_v45 = vpop.f32.mrf.mxu1 }
  0xec   :  { %344 = vst [vmem:[%s608_s2 + $0x8] sm:$0xff] %v312_v42   ;;  %348 = vst [vmem:[%s608_s2 + $0x28] sm:$0xff] %v332_v43  }
  0xed   :  { %v129_v46 = vpop.f32.mrf.mxu0  ;;  %v169_v47 = vpop.f32.mrf.mxu1 }
  0xee   :  { %v317_v48 = vpack.c.bf16 %v423_v44, %v129_v46  ;;  %v337_v49 = vpack.c.bf16 %v435_v45, %v169_v47 }
  0xef   :  { %v426_v50 = vpop.f32.mrf.mxu0  ;;  %v438_v51 = vpop.f32.mrf.mxu1 }
  0xf0   :  { %345 = vst [vmem:[%s608_s2 + $0x10] sm:$0xff] %v317_v48   ;;  %349 = vst [vmem:[%s608_s2 + $0x30] sm:$0xff] %v337_v49  }
  0xf1   :  { %v139_v52 = vpop.f32.mrf.mxu0  ;;  %v179_v53 = vpop.f32.mrf.mxu1 }
  0xf2   :  { %v322_v54 = vpack.c.bf16 %v426_v50, %v139_v52  ;;  %v342_v55 = vpack.c.bf16 %v438_v51, %v179_v53 }
  0xf4   :  { %346 = vst [vmem:[%s608_s2 + $0x18] sm:$0xff] %v322_v54   ;;  %350 = vst [vmem:[%s608_s2 + $0x38] sm:$0xff] %v342_v55  }

// kernel: _lambda_.5
= control target key start
LH: loop header
LB: loop body
LE: loop exit
PB: predicated region body
PF: predicated region fallthrough
CT: control target
= control target key end

     0   :  { %s586_s1 = inlined_call_operand.vmem [shape: bf16[128,128], index: 1, kind: input, shape index: {}]   ;;  %s587_s0 = inlined_call_operand.vmem [shape: bf16[128,128], index: 0, kind: input, shape index: {}]   ;;  %s588_s2 = inlined_call_operand.vmem [shape: f32[1,128], index: 2, kind: input, shape index: {}]   ;;  %s589_s3 = inlined_call_operand.vmem [shape: f32[128,128], index: 3, kind: output, shape index: {}]  }
   0x1   :  { %v451_v0 = vld [vmem:[%s586_s1 + $0x38] sm:$0xff]   ;;  %v452_v1 = vld [vmem:[%s586_s1 + $0x30] sm:$0xff]   ;;  %v453_v2 = vld [vmem:[%s586_s1 + $0x28] sm:$0xff]  }
   0x2   :  { %403 = vmatprep.subr.bf16.mxu0 %v451_v0  ;;  %435 = vmatprep.subr.bf16.mxu1 %v451_v0  ;;  %v454_v3 = vld [vmem:[%s586_s1 + $0x20] sm:$0xff]   ;;  %v455_v6 = vld [vmem:[%s586_s1 + $0x18] sm:$0xff]   ;;  %v456_v7 = vld [vmem:[%s586_s1 + $0x10] sm:$0xff]  }
   0x3   :  { %404 = vmatpush3.bf16.msra.mxu0 %v451_v0  ;;  %443 = vmatpush3.bf16.msra.mxu1 %v451_v0  ;;  %v459_v4 = vld [vmem:[%s587_s0] sm:$0xff]   ;;  %v457_v8 = vld [vmem:[%s586_s1 + $0x8] sm:$0xff]   ;;  %v463_v12 = vld [vmem:[%s587_s0 + $0x10] sm:$0xff]  }
   0x4   :  { %405 = vmatprep.subr.bf16.mxu0 %v452_v1  ;;  %436 = vmatprep.subr.bf16.mxu1 %v452_v1  ;;  %v460_v5 = vld [vmem:[%s587_s0 + $0x20] sm:$0xff]   ;;  %v461_v10 = vld [vmem:[%s587_s0 + $0x8] sm:$0xff]   ;;  %v464_v13 = vld [vmem:[%s587_s0 + $0x30] sm:$0xff]  }
   0x5   :  { %419 = vmatprep.mubr.bf16.mxu0 %v459_v4  ;;  %427 = vmatprep.mubr.bf16.mxu1 %v460_v5  ;;  %v458_v9 = vld [vmem:[%s586_s1] sm:$0xff]   ;;  %v462_v11 = vld [vmem:[%s587_s0 + $0x28] sm:$0xff]   ;;  %v465_v14 = vld [vmem:[%s587_s0 + $0x18] sm:$0xff]  }
   0x6   :  { %v466_v15 = vld [vmem:[%s587_s0 + $0x38] sm:$0xff]   ;;  %v386_v16 = vld [vmem:[%s588_s2] ss:$0 sm:$0xff] }
   0x7   :  { %406 = vmatpush3.bf16.msra.mxu0 %v452_v1  ;;  %444 = vmatpush3.bf16.msra.mxu1 %v452_v1 }
   0x8   :  { %407 = vmatprep.subr.bf16.mxu0 %v453_v2  ;;  %437 = vmatprep.subr.bf16.mxu1 %v453_v2 }
   0xb   :  { %408 = vmatpush3.bf16.msra.mxu0 %v453_v2  ;;  %445 = vmatpush3.bf16.msra.mxu1 %v453_v2 }
   0xc   :  { %409 = vmatprep.subr.bf16.mxu0 %v454_v3  ;;  %438 = vmatprep.subr.bf16.mxu1 %v454_v3 }
   0xf   :  { %410 = vmatpush3.bf16.msra.mxu0 %v454_v3  ;;  %446 = vmatpush3.bf16.msra.mxu1 %v454_v3 }
  0x10   :  { %411 = vmatprep.subr.bf16.mxu0 %v455_v6  ;;  %439 = vmatprep.subr.bf16.mxu1 %v455_v6 }
  0x13   :  { %412 = vmatpush3.bf16.msra.mxu0 %v455_v6  ;;  %447 = vmatpush3.bf16.msra.mxu1 %v455_v6 }
  0x14   :  { %413 = vmatprep.subr.bf16.mxu0 %v456_v7  ;;  %440 = vmatprep.subr.bf16.mxu1 %v456_v7 }
  0x17   :  { %414 = vmatpush3.bf16.msra.mxu0 %v456_v7  ;;  %448 = vmatpush3.bf16.msra.mxu1 %v456_v7 }
  0x18   :  { %415 = vmatprep.subr.bf16.mxu0 %v457_v8  ;;  %441 = vmatprep.subr.bf16.mxu1 %v457_v8 }
  0x1b   :  { %416 = vmatpush3.bf16.msra.mxu0 %v457_v8  ;;  %449 = vmatpush3.bf16.msra.mxu1 %v457_v8 }
  0x1c   :  { %417 = vmatprep.subr.bf16.mxu0 %v458_v9  ;;  %442 = vmatprep.subr.bf16.mxu1 %v458_v9 }
  0x1f   :  { %418 = vmatpush3.bf16.msra.mxu0 %v458_v9  ;;  %450 = vmatpush3.bf16.msra.mxu1 %v458_v9 }
  0x22   :  { %420 = vmatmul.mubr.bf16.vlgmr.msra.gmra.mxu0 %v461_v10  ;;  %428 = vmatmul.mubr.bf16.vlgmr.msra.gmra.mxu1 %v462_v11 }
  0x23   :  { %423 = vmatprep.mubr.bf16.mxu0 %v463_v12  ;;  %431 = vmatprep.mubr.bf16.mxu1 %v464_v13 }
  0x2a   :  { %424 = vmatmul.mubr.bf16.gmra.mxu0 %v465_v14  ;;  %432 = vmatmul.mubr.bf16.gmra.mxu1 %v466_v15 }
  0xe2   :  { %v421_v17 = vpop.f32.mrf.mxu0  ;;  %v429_v18 = vpop.f32.mrf.mxu1 }
  0xe3   :  { %v336_v19 = vadd.f32 %v421_v17, %v386_v16  ;;  %v344_v20 = vadd.f32 %v429_v18, %v386_v16 }
  0xe4   :  { %v213_v21 = vpop.f32.mrf.mxu0  ;;  %v245_v22 = vpop.f32.mrf.mxu1 }
  0xe5   :  { %352 = vst [vmem:[%s589_s3 + $0x10] sm:$0xff] %v336_v19  ;;  %360 = vst [vmem:[%s589_s3 + $0x50] sm:$0xff] %v344_v20  ;;  %v334_v23 = vadd.f32 %v386_v16, %v213_v21  ;;  %v342_v24 = vadd.f32 %v386_v16, %v245_v22 }
  0xe6   :  { %v422_v25 = vpop.f32.mrf.mxu0  ;;  %v430_v26 = vpop.f32.mrf.mxu1 }
  0xe7   :  { %350 = vst [vmem:[%s589_s3] sm:$0xff] %v334_v23  ;;  %358 = vst [vmem:[%s589_s3 + $0x40] sm:$0xff] %v342_v24  ;;  %v337_v27 = vadd.f32 %v422_v25, %v386_v16  ;;  %v345_v28 = vadd.f32 %v430_v26, %v386_v16 }
  0xe8   :  { %v216_v29 = vpop.f32.mrf.mxu0  ;;  %v248_v30 = vpop.f32.mrf.mxu1 }
  0xe9   :  { %353 = vst [vmem:[%s589_s3 + $0x18] sm:$0xff] %v337_v27  ;;  %361 = vst [vmem:[%s589_s3 + $0x58] sm:$0xff] %v345_v28  ;;  %v335_v31 = vadd.f32 %v386_v16, %v216_v29  ;;  %v343_v32 = vadd.f32 %v386_v16, %v248_v30 }
  0xea   :  { %v425_v33 = vpop.f32.mrf.mxu0  ;;  %v433_v34 = vpop.f32.mrf.mxu1 }
  0xeb   :  { %351 = vst [vmem:[%s589_s3 + $0x8] sm:$0xff] %v335_v31  ;;  %359 = vst [vmem:[%s589_s3 + $0x48] sm:$0xff] %v343_v32  ;;  %v340_v35 = vadd.f32 %v425_v33, %v386_v16  ;;  %v348_v36 = vadd.f32 %v433_v34, %v386_v16 }
  0xec   :  { %v229_v37 = vpop.f32.mrf.mxu0  ;;  %v261_v38 = vpop.f32.mrf.mxu1 }
  0xed   :  { %356 = vst [vmem:[%s589_s3 + $0x30] sm:$0xff] %v340_v35  ;;  %364 = vst [vmem:[%s589_s3 + $0x70] sm:$0xff] %v348_v36  ;;  %v338_v39 = vadd.f32 %v386_v16, %v229_v37  ;;  %v346_v40 = vadd.f32 %v386_v16, %v261_v38 }
  0xee   :  { %v426_v41 = vpop.f32.mrf.mxu0  ;;  %v434_v42 = vpop.f32.mrf.mxu1 }
  0xef   :  { %354 = vst [vmem:[%s589_s3 + $0x20] sm:$0xff] %v338_v39  ;;  %362 = vst [vmem:[%s589_s3 + $0x60] sm:$0xff] %v346_v40  ;;  %v341_v43 = vadd.f32 %v426_v41, %v386_v16  ;;  %v349_v44 = vadd.f32 %v434_v42, %v386_v16 }
  0xf0   :  { %v232_v45 = vpop.f32.mrf.mxu0  ;;  %v264_v46 = vpop.f32.mrf.mxu1 }
  0xf1   :  { %357 = vst [vmem:[%s589_s3 + $0x38] sm:$0xff] %v341_v43  ;;  %365 = vst [vmem:[%s589_s3 + $0x78] sm:$0xff] %v349_v44  ;;  %v339_v47 = vadd.f32 %v386_v16, %v232_v45  ;;  %v347_v48 = vadd.f32 %v386_v16, %v264_v46 }
  0xf3   :  { %355 = vst [vmem:[%s589_s3 + $0x28] sm:$0xff] %v339_v47  ;;  %363 = vst [vmem:[%s589_s3 + $0x68] sm:$0xff] %v347_v48 }

</bundles_post_ra>
